<compile_context>
chip_gen: v5e
topology: v5e:2x2
jax: 0.10.0
libtpu: 0.0.40
codegen_flags: <defaults>
</compile_context>

<pallas_src>
import jax
import jax.numpy as jnp
from jax.experimental import pallas as pl
from jax.experimental.pallas import tpu as pltpu

BN_EPS = 1e-5


def _round_up(x, m):
    return ((x + m - 1) // m) * m


def feature_block_kernel(x_ref, w_ref, scale_ref, shift_ref, o_ref):
    # x arrives in its native dtype (f32); cast to bf16 in-register just before the MXU
    # so the wrapper never materializes a padded/cast copy of x in HBM.
    x = x_ref[...].astype(jnp.bfloat16)
    y = jnp.dot(x, w_ref[...], preferred_element_type=jnp.float32)   # MXU, f32 accum
    # Fused Linear-bias + eval-mode BatchNorm1d as a single per-feature FMA (VPU).
    o_ref[...] = (y * scale_ref[...] + shift_ref[...]).astype(o_ref.dtype)


def prepare_feature_block_params(weight, bias, gamma, beta,
                                 running_mean, running_var, eps=BN_EPS):
    """One-time parameter prep (call at init, NOT per forward): fold BN, transpose, cast.

    weight: (low_dim, input_dim) as stored by nn.Linear; the rest are (low_dim,) vectors.
    Only the output/feature axis is padded (to 128) for lane-dense stores; the
    contraction axis D is left unpadded (full-extent blocks are exempt from the (8,128)
    rule and padding D would only inflate x HBM traffic).
    Returns (w_t bf16 (D, C_pad), scale f32 (1, C_pad), shift f32 (1, C_pad)).
    """
    C, D = weight.shape
    C_pad = _round_up(C, 128)
    scale = (gamma / jnp.sqrt(running_var + eps)).astype(jnp.float32)   # (C,)
    shift = ((bias - running_mean) * scale + beta).astype(jnp.float32)  # (C,)
    w_t = jnp.zeros((D, C_pad), jnp.bfloat16)
    w_t = w_t.at[:, :C].set(weight.T.astype(jnp.bfloat16))
    scale_p = jnp.zeros((1, C_pad), jnp.float32).at[0, :C].set(scale)
    shift_p = jnp.zeros((1, C_pad), jnp.float32).at[0, :C].set(shift)
    return w_t, scale_p, shift_p


def _vmem_capacity_bytes():
    try:
        return int(pltpu.get_tpu_info().vmem_capacity_bytes)
    except Exception:
        return 64 * 2**20   # conservative (v7x-sized) fallback


def _vmem_needed(tile, d, c_pad, x_bytes, out_bytes):
    return (2 * tile * d * x_bytes           # double-buffered x tiles (native dtype)
            + 2 * d * c_pad * 2              # weight (bf16; constant index map, DMA'd once)
            + 2 * 2 * c_pad * 4              # scale + shift rows (f32)
            + 2 * tile * c_pad * out_bytes)  # double-buffered output tiles


def feature_block_forward(x, w_t, scale, shift, *, out_dim,
                          out_dtype=jnp.float32, return_padded=False,
                          use_pallas=None):
    """x: (B, input_dim). w_t/scale/shift come from prepare_feature_block_params."""
    B, D = x.shape
    Dw, C_pad = w_t.shape
    assert Dw == D, (Dw, D)

    if use_pallas is None:
        # Tiny problems: custom-call + pipeline setup dwarfs the work; let XLA fuse it.
        use_pallas = (B * max(D, 128) >= 128 * 128)
    if not use_pallas:
        y = jnp.dot(x.astype(jnp.bfloat16), w_t, preferred_element_type=jnp.float32)
        y = (y * scale + shift).astype(out_dtype)
        return y if return_padded else y[:, :out_dim]

    x_bytes = jnp.dtype(x.dtype).itemsize
    out_bytes = jnp.dtype(out_dtype).itemsize

    vmem_cap = _vmem_capacity_bytes()
    budget = max(16 * 2**20, vmem_cap - 8 * 2**20)   # headroom for Mosaic scratch

    # Batch tile: 128 MiB parts (v5e/v6e) take 1024-row tiles, 64 MiB parts (v7x) 512;
    # clamp to the sublane-rounded batch, split large single-tile batches into >=2 grid
    # steps (megacore), then shrink until the double-buffered estimate fits the budget.
    tile = 1024 if vmem_cap >= 96 * 2**20 else 512
    tile = min(tile, _round_up(B, 8))
    if B >= 256 and pl.cdiv(B, tile) == 1:
        tile = _round_up(pl.cdiv(B, 2), 8)   # >=2 steps so both v7x TCs get a pipeline
    while tile > 8 and _vmem_needed(tile, D, C_pad, x_bytes, out_bytes) > budget:
        tile = max(8, _round_up(tile // 2, 8))
    # TODO(synk): if even an 8-row tile exceeds the budget (very large input_dim), add a
    # K grid axis over D with an f32 accumulator scratch instead of relying on spilling.

    needed = _vmem_needed(tile, D, C_pad, x_bytes, out_bytes)
    vmem_limit = int(min(budget, max(32 * 2**20, needed + 4 * 2**20)))

    grid = (pl.cdiv(B, tile),)   # partial tail block is masked; no batch padding pass

    out = pl.pallas_call(
        feature_block_kernel,
        out_shape=jax.ShapeDtypeStruct((B, C_pad), out_dtype),
        grid_spec=pltpu.PrefetchScalarGridSpec(
            num_scalar_prefetch=0,
            grid=grid,
            in_specs=[
                pl.BlockSpec((tile, D), lambda i: (i, 0)),      # x batch tile (native f32)
                pl.BlockSpec((D, C_pad), lambda i: (0, 0)),     # W^T resident (fetched once)
                pl.BlockSpec((1, C_pad), lambda i: (0, 0)),     # fused BN scale
                pl.BlockSpec((1, C_pad), lambda i: (0, 0)),     # fused BN/bias shift
            ],
            out_specs=pl.BlockSpec((tile, C_pad), lambda i: (i, 0)),
        ),
        compiler_params=pltpu.CompilerParams(
            dimension_semantics=("parallel",),
            vmem_limit_bytes=vmem_limit),
    )(x, w_t, scale, shift)

    return out if return_padded else out[:, :out_dim]


if __name__ == "__main__":
    # Small shapes consistent with the module: x is (batch, input_dim).
    B, INPUT_DIM, LOW_DIM = 8, 32, 16

    key = jax.random.PRNGKey(0)
    kx, kw, kg, km, kv = jax.random.split(key, 5)

    x = jax.random.normal(kx, (B, INPUT_DIM), dtype=jnp.float32)

    # weights_init_kaiming: Linear.weight ~ kaiming_normal(fan_out) => std = sqrt(2/low_dim),
    # Linear.bias = 0; BatchNorm1d.weight ~ N(1, 0.01), BatchNorm1d.bias = 0.
    weight = jnp.sqrt(2.0 / LOW_DIM) * jax.random.normal(
        kw, (LOW_DIM, INPUT_DIM), dtype=jnp.float32)
    bias = jnp.zeros((LOW_DIM,), dtype=jnp.float32)
    gamma = 1.0 + 0.01 * jax.random.normal(kg, (LOW_DIM,), dtype=jnp.float32)
    beta = jnp.zeros((LOW_DIM,), dtype=jnp.float32)
    # Non-trivial running stats to exercise the eval-mode BN math.
    running_mean = 0.1 * jax.random.normal(km, (LOW_DIM,), dtype=jnp.float32)
    running_var = jax.random.uniform(kv, (LOW_DIM,), jnp.float32, 0.5, 1.5)

    w_t, scale_p, shift_p = prepare_feature_block_params(
        weight, bias, gamma, beta, running_mean, running_var)

    # Default path: f32 output, sliced to (B, low_dim) -- module-faithful.
    out = feature_block_forward(x, w_t, scale_p, shift_p,
                                out_dim=LOW_DIM, use_pallas=True)
    out = jax.block_until_ready(out)
    assert out.shape == (B, LOW_DIM) and out.dtype == jnp.float32

    # Reference 1: same bf16 rounding of x/W, f32 math -> tight tolerance.
    xb = x.astype(jnp.bfloat16).astype(jnp.float32)
    wb = weight.astype(jnp.bfloat16).astype(jnp.float32)
    scale = gamma / jnp.sqrt(running_var + BN_EPS)
    shift = (bias - running_mean) * scale + beta
    ref_bf16 = (xb @ wb.T) * scale[None, :] + shift[None, :]
    assert jnp.allclose(out, ref_bf16, atol=1e-4, rtol=1e-4)

    # Reference 2: full-precision module math (Linear -> eval BatchNorm1d), loose tolerance.
    ref_f32 = gamma * ((x @ weight.T + bias) - running_mean) / jnp.sqrt(
        running_var + BN_EPS) + beta
    assert jnp.allclose(out, ref_f32, atol=5e-2, rtol=5e-2)

    # Bandwidth-saving path: bf16, lane-padded (B, C_pad) slab for fused consumers.
    out_bf16 = feature_block_forward(x, w_t, scale_p, shift_p, out_dim=LOW_DIM,
                                     out_dtype=jnp.bfloat16, return_padded=True,
                                     use_pallas=True)
    out_bf16 = jax.block_until_ready(out_bf16)
    assert out_bf16.shape == (B, 128) and out_bf16.dtype == jnp.bfloat16
    assert jnp.allclose(out_bf16[:, :LOW_DIM].astype(jnp.float32), ref_bf16,
                        atol=5e-2, rtol=2e-2)

    print("KERNEL_OK")
</pallas_src>

<mosaic_0001>
module attributes {stable_mosaic.version = 11 : i64} {
  func.func @feature_block_kernel(%arg0: i32, %arg1: memref<8x32xf32, #tpu.memory_space<vmem>>, %arg2: memref<32x128xbf16, #tpu.memory_space<vmem>>, %arg3: memref<1x128xf32, #tpu.memory_space<vmem>>, %arg4: memref<1x128xf32, #tpu.memory_space<vmem>>, %arg5: memref<8x128xf32, #tpu.memory_space<vmem>>) attributes {dimension_semantics = [#tpu.dimension_semantics<parallel>], iteration_bounds = array<i64: 1>, scalar_prefetch = 0 : i64, scratch_operands = 0 : i64, tpu.core_type = #tpu.core_type<tc>, window_params = [{transform_indices = @transform_0, window_bounds = array<i64: 8, 32>}, {pipeline_mode = #tpu.pipeline_mode<synchronous>, transform_indices = @transform_1, window_bounds = array<i64: 32, 128>}, {pipeline_mode = #tpu.pipeline_mode<synchronous>, transform_indices = @transform_2, window_bounds = array<i64: 1, 128>}, {pipeline_mode = #tpu.pipeline_mode<synchronous>, transform_indices = @transform_3, window_bounds = array<i64: 1, 128>}, {transform_indices = @transform_4, window_bounds = array<i64: 8, 128>}]} {
    %c0 = arith.constant 0 : index
    %c0_0 = arith.constant 0 : index
    %0 = vector.load %arg1[%c0, %c0_0] : memref<8x32xf32, #tpu.memory_space<vmem>>, vector<8x32xf32>
    %1 = arith.truncf %0 : vector<8x32xf32> to vector<8x32xbf16>
    %c0_1 = arith.constant 0 : index
    %c0_2 = arith.constant 0 : index
    %2 = vector.load %arg2[%c0_1, %c0_2] : memref<32x128xbf16, #tpu.memory_space<vmem>>, vector<32x128xbf16>
    %cst = arith.constant dense<0.000000e+00> : vector<8x128xf32>
    %3 = tpu.matmul %1, %2, %cst {dimension_numbers = #tpu.dot_dimension_numbers<[1], [0], [0], [1], [0, 0, 1, 1], [], []>} : vector<8x32xbf16>, vector<32x128xbf16>, vector<8x128xf32> -> vector<8x128xf32>
    %c0_3 = arith.constant 0 : index
    %c0_4 = arith.constant 0 : index
    %4 = vector.load %arg3[%c0_3, %c0_4] : memref<1x128xf32, #tpu.memory_space<vmem>>, vector<1x128xf32>
    %5 = vector.broadcast %4 : vector<1x128xf32> to vector<8x128xf32>
    %6 = arith.mulf %3, %5 : vector<8x128xf32>
    %c0_5 = arith.constant 0 : index
    %c0_6 = arith.constant 0 : index
    %7 = vector.load %arg4[%c0_5, %c0_6] : memref<1x128xf32, #tpu.memory_space<vmem>>, vector<1x128xf32>
    %8 = vector.broadcast %7 : vector<1x128xf32> to vector<8x128xf32>
    %9 = arith.addf %6, %8 : vector<8x128xf32>
    %c0_7 = arith.constant 0 : index
    %c0_8 = arith.constant 0 : index
    %10 = vector.load %arg5[%c0_7, %c0_8] : memref<8x128xf32, #tpu.memory_space<vmem>>, vector<8x128xf32>
    tpu.vector_store %arg5[%c0_7, %c0_8], %9 {strides = array<i32>} : memref<8x128xf32, #tpu.memory_space<vmem>>, vector<8x128xf32>,
    return
  }
  func.func @transform_0(%arg0: i32) -> (i32, i32) {
    %c0_i32 = arith.constant 0 : i32
    %c0_i32_0 = arith.constant 0 : i32
    return %arg0, %c0_i32 : i32, i32
  }
  func.func @transform_1(%arg0: i32) -> (i32, i32) {
    %c0_i32 = arith.constant 0 : i32
    %c0_i32_0 = arith.constant 0 : i32
    %c0_i32_1 = arith.constant 0 : i32
    return %c0_i32, %c0_i32_0 : i32, i32
  }
  func.func @transform_2(%arg0: i32) -> (i32, i32) {
    %c0_i32 = arith.constant 0 : i32
    %c0_i32_0 = arith.constant 0 : i32
    %c0_i32_1 = arith.constant 0 : i32
    return %c0_i32, %c0_i32_0 : i32, i32
  }
  func.func @transform_3(%arg0: i32) -> (i32, i32) {
    %c0_i32 = arith.constant 0 : i32
    %c0_i32_0 = arith.constant 0 : i32
    %c0_i32_1 = arith.constant 0 : i32
    return %c0_i32, %c0_i32_0 : i32, i32
  }
  func.func @transform_4(%arg0: i32) -> (i32, i32) {
    %c0_i32 = arith.constant 0 : i32
    %c0_i32_0 = arith.constant 0 : i32
    return %arg0, %c0_i32 : i32, i32
  }
}

</mosaic_0001>

<bundles_post_ra>
// kernel: tpu_custom_call.1
= control target key start
LH: loop header
LB: loop body
LE: loop exit
PB: predicated region body
PF: predicated region fallthrough
CT: control target
= control target key end

     0   :  { %9 = vsyncpa [#allocation3], 0  ;;  %s254_s0 = inlined_call_operand.hbm [shape: f32[8,32], index: 0, kind: input, shape index: {}]   ;;  %s255_s1 = inlined_call_operand.hbm [shape: bf16[32,128], index: 1, kind: input, shape index: {}]   ;;  %s256_s2 = inlined_call_operand.vmem [shape: f32[1,128], index: 2, kind: input, shape index: {}]   ;;  %s257_s3 = inlined_call_operand.vmem [shape: f32[1,128], index: 3, kind: input, shape index: {}]   ;;  %s258_s4 = inlined_call_operand.hbm [shape: f32[8,128], index: 4, kind: output, shape index: {}]  }
   0x1   :  { %10 = vsyncpa [#allocation6], 0 }
   0x2   :  { %11 = vsyncpa [#allocation4], 0  ;;  %s17_s17 = sshll.u32 %s254_s0, 4  ;;  %s209_s18 = smov [#allocation2]   ;;  %s18_s17 = int_to_ptr.hbm [resolvable:$true] %s17_s17 }
   0x3   :  { %s19_s19 = sshll.u32 %s209_s18, 4  ;;  %s27_s22 = sshll.u32 %s255_s1, 4  ;;  %s20_s19 = int_to_ptr.vmem [resolvable:$true] %s19_s19  ;;  %s28_s22 = int_to_ptr.hbm [resolvable:$true] %s27_s22 }
   0x4   :  { %22 = dma.hbm_to_vmem [thread:$0]  %s18_s17, 128, %s20_s19, [#allocation3]  }
   0x5   :  { %s210_s23 = smov [#allocation5]   ;;  %s211_s25 = smov 64  }
   0x6   :  { %s29_s24 = sshll.u32 %s210_s23, 4  ;;  %s212_s26 = smov 4   ;;  %s30_s24 = int_to_ptr.vmem [resolvable:$true] %s29_s24 }
   0x7   :  { %35 = dma.hbm_to_vmem [thread:$0]  %s28_s22, 256, %s30_s24, [#allocation6], %s211_s25, %s211_s25, %s212_s26  }
   0x8   :  { %203 = dma.done.wait [#allocation3], 128  }
   0x9   :  { %204 = vsyncadd [#allocation3], 4294967168 }
   0xa   :  { %205 = dma.done.wait [#allocation6], 256  }
   0xb   :  { %206 = vsyncadd [#allocation6], 4294967040  ;;  %v123_v0 = vld [vmem:[#allocation5 + $0x8] sm:$0xff]  ;;  %v122_v1 = vld [vmem:[#allocation5] sm:$0xff]  ;;  %vm67_vm0 = vcmask 261120   ;;  %s213_s29 = smov [#allocation7]  }
   0xc   :  { %77 = vmatpush.bf16.msra.mxu0 %v123_v0  ;;  %v49_v2 = vld [vmem:[#allocation2] sm:$0xff]  ;;  %s100_s30 = sshll.u32 %s213_s29, 4  ;;  %s102_s7 = sshll.u32 %s258_s4, 4  ;;  %s101_s30 = int_to_ptr.vmem [resolvable:$true] %s100_s30  ;;  %s103_s7 = int_to_ptr.hbm [resolvable:$true] %s102_s7 }
   0xd   :  { %v50_v3 = vpack.c.bf16 %v49_v2, %v49_v2  ;;  %v129_v4 = vld [vmem:[%s256_s2] ss:$0 sm:$0xff] }
   0xe   :  { %v130_v5 = vld [vmem:[%s257_s3] ss:$0 sm:$0xff] }
  0x10   :  { %78 = vmatpush.bf16.msra.mxu0 %v122_v1 }
  0x13   :  { %121 = vmatmul.msk.bf16.vlgmr.msra.gmra.mxu0 %vm67_vm0, %v50_v3 }
  0x90   :  { %v80_v6 = vpop.f32.mrf.mxu0 }
  0x91   :  { %v88_v7 = vmul.f32 %v129_v4, %v80_v6 }
  0x93   :  { %v93_v8 = vadd.f32 %v130_v5, %v88_v7 }
  0x95   :  { %94 = vst [vmem:[#allocation7] sm:$0xff] %v93_v8 }
  0x96   :  { %105 = dma.vmem_to_hbm [thread:$0]  %s101_s30, 128, %s103_s7, [#allocation4]  }
  0x98   :  { %v82_v9 = vpop.f32.mrf.mxu0 }
  0x99   :  { %207 = dma.done.wait [#allocation4], 128  }
  0x9a   :  { %208 = vsyncadd [#allocation4], 4294967168 }
  0x9b   :  { %110 = vsyncpa [#allocation3], 1 }
  0x9c   :  { %111 = vsyncpa [#allocation6], 1 }
  0x9d   :  { %112 = vsyncpa [#allocation4], 1 }

</bundles_post_ra>
